<compile_context>
chip_gen: v7x
topology: tpu7x:2x2x1
jax: 0.10.0
libtpu: 0.0.40
codegen_flags: <defaults>
</compile_context>

<pallas_src>
import math

import jax
import jax.numpy as jnp
from jax.experimental import pallas as pl
from jax.experimental.pallas import tpu as pltpu


def _mix32(x):
    """murmur3-style 32-bit finalizer (uint32 lanes, VPU-only ops)."""
    x = x ^ (x >> jnp.uint32(16))
    x = x * jnp.uint32(0x7FEB352D)
    x = x ^ (x >> jnp.uint32(15))
    x = x * jnp.uint32(0x846CA68B)
    x = x ^ (x >> jnp.uint32(16))
    return x


def _random_utility_kernel(seed_ref, o_ref):
    tile_rows, tile_cols = o_ref.shape

    # Global element index of every entry of this output tile (int32 math,
    # then reinterpret as uint32 counter).
    row_ids = jax.lax.broadcasted_iota(jnp.int32, (tile_rows, tile_cols), 0)
    col_ids = jax.lax.broadcasted_iota(jnp.int32, (tile_rows, tile_cols), 1)
    row_ids = row_ids + pl.program_id(0) * tile_rows
    idx = (row_ids * tile_cols + col_ids).astype(jnp.uint32)

    # Counter-based PRNG keyed by the (runtime) seed scalar held in SMEM.
    seed = seed_ref[0].astype(jnp.uint32) * jnp.uint32(0x9E3779B9)
    bits = _mix32(idx ^ seed)
    bits = _mix32(bits + jnp.uint32(0x85EBCA6B))

    # Top 24 bits -> uniform float32 in [0, 1).
    u01 = (bits >> jnp.uint32(8)).astype(jnp.int32).astype(jnp.float32)
    o_ref[...] = u01 * jnp.float32(1.0 / (1 << 24))


def random_utility(samples: jax.Array, random_seed: int = 0,
                   *, max_tile_rows: int = 512) -> jax.Array:
    """JAX/Pallas equivalent of Random.forward(samples)."""
    shape = samples.shape
    cols = shape[-1]
    rows = max(1, math.prod(shape[:-1]))

    # Tile over the flattened leading axis; keep the full (lane-dense) last dim.
    if rows <= max_tile_rows:
        tile_rows = rows                      # full dim -> no (8,128) constraint
    else:
        tile_rows = max(8, (max_tile_rows // 8) * 8)
    grid = (pl.cdiv(rows, tile_rows),)

    seed = jnp.array([random_seed], dtype=jnp.int32)
    out_bytes = rows * cols * 4

    rand2d = pl.pallas_call(
        _random_utility_kernel,
        out_shape=jax.ShapeDtypeStruct((rows, cols), jnp.float32),
        grid=grid,
        in_specs=[pl.BlockSpec(memory_space=pltpu.MemorySpace.SMEM)],  # seed scalar
        out_specs=pl.BlockSpec((tile_rows, cols), lambda i: (i, 0)),
        compiler_params=pltpu.CompilerParams(
            dimension_semantics=("parallel",),
        ),
        cost_estimate=pl.CostEstimate(
            flops=12 * rows * cols, transcendentals=0, bytes_accessed=out_bytes),
    )(seed)

    rand = rand2d.reshape(shape).astype(samples.dtype)

    # Dummy graph-dependency term from the reference module, kept at the JAX
    # level (it is multiplied by 0.0: exactly zero for finite inputs, and it
    # preserves NaN/Inf propagation + autodiff-graph membership like torch).
    dummy = 0.0 * jnp.mean(samples, axis=0, keepdims=True)
    return rand + dummy.astype(samples.dtype)


if __name__ == "__main__":
    # Small shapes consistent with the module: samples is `num_samples x ...`.
    num_samples, batch, dim = 8, 16, 128
    key = jax.random.PRNGKey(0)
    samples = jax.random.normal(key, (num_samples, batch, dim), dtype=jnp.float32)

    out = random_utility(samples, random_seed=0)
    out = jax.block_until_ready(out)

    assert out.shape == samples.shape, (out.shape, samples.shape)
    assert out.dtype == samples.dtype
    assert bool(jnp.all(jnp.isfinite(out)))
    # uniform [0, 1) just like torch.rand_like
    assert bool(jnp.all(out >= 0.0)) and bool(jnp.all(out < 1.0))
    # deterministic per seed (matches torch.manual_seed(random_seed) semantics)
    out2 = jax.block_until_ready(random_utility(samples, random_seed=0))
    assert bool(jnp.all(out == out2))

    print("KERNEL_OK")
</pallas_src>

<mosaic_0001>
module attributes {stable_mosaic.version = 11 : i64} {
  func.func @_random_utility_kernel(%arg0: i32, %arg1: memref<1xi32, #tpu.memory_space<smem>>, %arg2: memref<128x128xf32, #tpu.memory_space<vmem>>) attributes {dimension_semantics = [#tpu.dimension_semantics<parallel>], iteration_bounds = array<i64: 1>, scalar_prefetch = 0 : i64, scratch_operands = 0 : i64, tpu.core_type = #tpu.core_type<tc>, window_params = [{transform_indices = @transform_0, window_bounds = array<i64: 1>}, {transform_indices = @transform_1, window_bounds = array<i64: 128, 128>}]} {
    %0 = tpu.iota {dimensions = array<i32: 0>} : vector<128x128xi32>
    %1 = tpu.iota {dimensions = array<i32: 1>} : vector<128x128xi32>
    %c128_i32 = arith.constant 128 : i32
    %2 = arith.muli %arg0, %c128_i32 : i32
    %3 = vector.broadcast %2 : i32 to vector<128x128xi32>
    %4 = arith.addi %0, %3 : vector<128x128xi32>
    %c128_i32_0 = arith.constant 128 : i32
    %5 = vector.broadcast %c128_i32_0 : i32 to vector<128x128xi32>
    %6 = arith.muli %4, %5 : vector<128x128xi32>
    %7 = arith.addi %6, %1 : vector<128x128xi32>
    %c0 = arith.constant 0 : index
    %8 = memref.load %arg1[%c0] : memref<1xi32, #tpu.memory_space<smem>>
    %c-1640531527_i32 = arith.constant -1640531527 : i32
    %9 = arith.muli %8, %c-1640531527_i32 : i32
    %10 = vector.broadcast %9 : i32 to vector<128x128xi32>
    %11 = arith.xori %7, %10 : vector<128x128xi32>
    %c16_i32 = arith.constant 16 : i32
    %12 = vector.broadcast %c16_i32 : i32 to vector<128x128xi32>
    %13 = arith.shrui %11, %12 : vector<128x128xi32>
    %14 = arith.xori %11, %13 : vector<128x128xi32>
    %c2146121005_i32 = arith.constant 2146121005 : i32
    %15 = vector.broadcast %c2146121005_i32 : i32 to vector<128x128xi32>
    %16 = arith.muli %14, %15 : vector<128x128xi32>
    %c15_i32 = arith.constant 15 : i32
    %17 = vector.broadcast %c15_i32 : i32 to vector<128x128xi32>
    %18 = arith.shrui %16, %17 : vector<128x128xi32>
    %19 = arith.xori %16, %18 : vector<128x128xi32>
    %c-2073254261_i32 = arith.constant -2073254261 : i32
    %20 = vector.broadcast %c-2073254261_i32 : i32 to vector<128x128xi32>
    %21 = arith.muli %19, %20 : vector<128x128xi32>
    %c16_i32_1 = arith.constant 16 : i32
    %22 = vector.broadcast %c16_i32_1 : i32 to vector<128x128xi32>
    %23 = arith.shrui %21, %22 : vector<128x128xi32>
    %24 = arith.xori %21, %23 : vector<128x128xi32>
    %c-2048144789_i32 = arith.constant -2048144789 : i32
    %25 = vector.broadcast %c-2048144789_i32 : i32 to vector<128x128xi32>
    %26 = arith.addi %24, %25 : vector<128x128xi32>
    %c16_i32_2 = arith.constant 16 : i32
    %27 = vector.broadcast %c16_i32_2 : i32 to vector<128x128xi32>
    %28 = arith.shrui %26, %27 : vector<128x128xi32>
    %29 = arith.xori %26, %28 : vector<128x128xi32>
    %c2146121005_i32_3 = arith.constant 2146121005 : i32
    %30 = vector.broadcast %c2146121005_i32_3 : i32 to vector<128x128xi32>
    %31 = arith.muli %29, %30 : vector<128x128xi32>
    %c15_i32_4 = arith.constant 15 : i32
    %32 = vector.broadcast %c15_i32_4 : i32 to vector<128x128xi32>
    %33 = arith.shrui %31, %32 : vector<128x128xi32>
    %34 = arith.xori %31, %33 : vector<128x128xi32>
    %c-2073254261_i32_5 = arith.constant -2073254261 : i32
    %35 = vector.broadcast %c-2073254261_i32_5 : i32 to vector<128x128xi32>
    %36 = arith.muli %34, %35 : vector<128x128xi32>
    %c16_i32_6 = arith.constant 16 : i32
    %37 = vector.broadcast %c16_i32_6 : i32 to vector<128x128xi32>
    %38 = arith.shrui %36, %37 : vector<128x128xi32>
    %39 = arith.xori %36, %38 : vector<128x128xi32>
    %c8_i32 = arith.constant 8 : i32
    %40 = vector.broadcast %c8_i32 : i32 to vector<128x128xi32>
    %41 = arith.shrui %39, %40 : vector<128x128xi32>
    %42 = arith.sitofp %41 : vector<128x128xi32> to vector<128x128xf32>
    %cst = arith.constant 5.96046448E-8 : f32
    %43 = vector.broadcast %cst : f32 to vector<128x128xf32>
    %44 = arith.mulf %42, %43 : vector<128x128xf32>
    %c0_7 = arith.constant 0 : index
    %c0_8 = arith.constant 0 : index
    %45 = vector.load %arg2[%c0_7, %c0_8] : memref<128x128xf32, #tpu.memory_space<vmem>>, vector<128x128xf32>
    tpu.vector_store %arg2[%c0_7, %c0_8], %44 {strides = array<i32>} : memref<128x128xf32, #tpu.memory_space<vmem>>, vector<128x128xf32>,
    return
  }
  func.func @transform_0(%arg0: i32) -> i32 {
    %c0_i32 = arith.constant 0 : i32
    %c0_i32_0 = arith.constant 0 : i32
    return %c0_i32 : i32
  }
  func.func @transform_1(%arg0: i32) -> (i32, i32) {
    %c0_i32 = arith.constant 0 : i32
    %c0_i32_0 = arith.constant 0 : i32
    return %arg0, %c0_i32 : i32, i32
  }
}

</mosaic_0001>

<bundles_post_ra>
// kernel: tpu_custom_call.1
= control target key start
LH: loop header
LB: loop body
LE: loop exit
PB: predicated region body
PF: predicated region fallthrough
CT: control target
= control target key end

     0   :  { %v10_v0 = vlaneseq  ;;  %s568_s0 = inlined_call_operand.<no memory space> [shape: s32[1], index: 0, kind: input, shape index: {}]   ;;  %s569_s1 = inlined_call_operand.hbm [shape: f32[128,128], index: 1, kind: output, shape index: {}]  }
   0x1   :  { %s80_s8 = smul.u32 2654435769, %s568_s0 }
   0x2   :  { %7 = vsyncpa [#allocation4], 0  ;;  %v493_v1 = vshrl.u32 %v10_v0, 7  ;;  %v495_v2 = vand.u32 127, %v10_v0  ;;  %s477_s0 = smov [#allocation3]  }
   0x3   :  { %v497_v3 = vstv %s80_s8  ;;  %s439_s9 = sshll.u32 %s477_s0, 4  ;;  %s440_s9 = int_to_ptr.vmem [resolvable:$true] %s439_s9 }
   0x4   :  { %v47_v4 = vmul.u32 128, %v493_v1  ;;  %v12_v5 = vadd.s32 8, %v493_v1  ;;  %v13_v6 = vadd.s32 16, %v493_v1  ;;  %v14_v7 = vadd.s32 24, %v493_v1  ;;  %s453_s10 = scalar_lea.vmem %s440_s9, 2048  ;;  %p458_p1 = scmp.lt.s32.totalorder %s440_s9, %s440_s9 }
   0x5   :  { %v15_v8 = vadd.s32 32, %v493_v1  ;;  %v16_v9 = vadd.s32 40, %v493_v1  ;;  %v17_v10 = vadd.s32 48, %v493_v1  ;;  %v18_v11 = vadd.s32 56, %v493_v1  ;;  %p454_p0 = scmp.ne.s32.totalorder %s440_s9, %s453_s10  ;;  %p459_p2 = scmp.lt.s32.totalorder %s453_s10, %s453_s10 }
   0x6   :  { %v63_v12 = vadd.s32 %v47_v4, %v495_v2  ;;  %v48_v13 = vmul.u32 128, %v12_v5  ;;  %v49_v14 = vmul.u32 128, %v13_v6  ;;  %v509_v15 = vadd.s32 64, %v493_v1 }
   0x7   :  { %v50_v16 = vmul.u32 128, %v14_v7  ;;  %v51_v17 = vmul.u32 128, %v15_v8  ;;  %v512_v18 = vadd.s32 72, %v493_v1  ;;  %v515_v19 = vadd.s32 80, %v493_v1  ;;  %p460_p3 = por %p459_p2, %p458_p1 }
   0x8   :  { %v82_v20 = vxor.u32 %v497_v3, %v63_v12  ;;  %v64_v21 = vadd.s32 %v48_v13, %v495_v2  ;;  %v65_v22 = vadd.s32 %v49_v14, %v495_v2  ;;  %v52_v23 = vmul.u32 128, %v16_v9 }
   0x9   :  { %v66_v24 = vadd.s32 %v50_v16, %v495_v2  ;;  %v67_v25 = vadd.s32 %v51_v17, %v495_v2  ;;  %v53_v26 = vmul.u32 128, %v17_v10  ;;  %v54_v27 = vmul.u32 128, %v18_v11  ;;  %p461_p4 = pnand %p460_p3, %p454_p0 }
   0xa   :  { %v98_v28 = vshrl.u32 %v82_v20, 16  ;;  %v83_v29 = vxor.u32 %v497_v3, %v64_v21  ;;  %v84_v30 = vxor.u32 %v497_v3, %v65_v22  ;;  %v68_v31 = vadd.s32 %v52_v23, %v495_v2 }
   0xb   :  { %v85_v32 = vxor.u32 %v497_v3, %v66_v24  ;;  %v86_v33 = vxor.u32 %v497_v3, %v67_v25  ;;  %v69_v34 = vadd.s32 %v53_v26, %v495_v2  ;;  %v70_v35 = vadd.s32 %v54_v27, %v495_v2 }
   0xc   :  { %v114_v36 = vxor.u32 %v98_v28, %v82_v20  ;;  %v99_v37 = vshrl.u32 %v83_v29, 16  ;;  %v100_v38 = vshrl.u32 %v84_v30, 16  ;;  %v87_v39 = vxor.u32 %v497_v3, %v68_v31 }
   0xd   :  { %v101_v40 = vshrl.u32 %v85_v32, 16  ;;  %v102_v41 = vshrl.u32 %v86_v33, 16  ;;  %v88_v42 = vxor.u32 %v497_v3, %v69_v34  ;;  %v89_v43 = vxor.u32 %v497_v3, %v70_v35 }
   0xe   :  { %v130_v44 = vmul.u32 2146121005, %v114_v36  ;;  %v115_v45 = vxor.u32 %v99_v37, %v83_v29  ;;  %v116_v46 = vxor.u32 %v100_v38, %v84_v30  ;;  %v103_v47 = vshrl.u32 %v87_v39, 16 }
   0xf   :  { %v117_v48 = vxor.u32 %v101_v40, %v85_v32  ;;  %v118_v49 = vxor.u32 %v102_v41, %v86_v33  ;;  %v104_v50 = vshrl.u32 %v88_v42, 16  ;;  %v105_v51 = vshrl.u32 %v89_v43, 16 }
  0x10   :  { %v146_v52 = vshrl.u32 %v130_v44, 15  ;;  %v131_v53 = vmul.u32 2146121005, %v115_v45  ;;  %v132_v54 = vmul.u32 2146121005, %v116_v46  ;;  %v119_v55 = vxor.u32 %v103_v47, %v87_v39 }
  0x11   :  { %v133_v56 = vmul.u32 2146121005, %v117_v48  ;;  %v134_v57 = vmul.u32 2146121005, %v118_v49  ;;  %v120_v58 = vxor.u32 %v104_v50, %v88_v42  ;;  %v121_v59 = vxor.u32 %v105_v51, %v89_v43 }
  0x12   :  { %v162_v60 = vxor.u32 %v146_v52, %v130_v44  ;;  %v147_v61 = vshrl.u32 %v131_v53, 15  ;;  %v148_v62 = vshrl.u32 %v132_v54, 15  ;;  %v135_v63 = vmul.u32 2146121005, %v119_v55 }
  0x13   :  { %v149_v0 = vshrl.u32 %v133_v56, 15  ;;  %v150_v4 = vshrl.u32 %v134_v57, 15  ;;  %v136_v5 = vmul.u32 2146121005, %v120_v58  ;;  %v137_v6 = vmul.u32 2146121005, %v121_v59 }
  0x14   :  { %v178_v7 = vmul.u32 2221713035, %v162_v60  ;;  %v163_v8 = vxor.u32 %v147_v61, %v131_v53  ;;  %v164_v9 = vxor.u32 %v148_v62, %v132_v54  ;;  %v151_v10 = vshrl.u32 %v135_v63, 15 }
  0x15   :  { %v165_v11 = vxor.u32 %v149_v0, %v133_v56  ;;  %v166_v12 = vxor.u32 %v150_v4, %v134_v57  ;;  %v152_v13 = vshrl.u32 %v136_v5, 15  ;;  %v153_v14 = vshrl.u32 %v137_v6, 15 }
  0x16   :  { %v194_v16 = vshrl.u32 %v178_v7, 16  ;;  %v179_v17 = vmul.u32 2221713035, %v163_v8  ;;  %v180_v20 = vmul.u32 2221713035, %v164_v9  ;;  %v167_v21 = vxor.u32 %v151_v10, %v135_v63 }
  0x17   :  { %v181_v22 = vmul.u32 2221713035, %v165_v11  ;;  %v182_v23 = vmul.u32 2221713035, %v166_v12  ;;  %v168_v24 = vxor.u32 %v152_v13, %v136_v5  ;;  %v169_v25 = vxor.u32 %v153_v14, %v137_v6 }
  0x18   :  { %v210_v26 = vxor.u32 %v194_v16, %v178_v7  ;;  %v195_v27 = vshrl.u32 %v179_v17, 16  ;;  %v196_v28 = vshrl.u32 %v180_v20, 16  ;;  %v183_v29 = vmul.u32 2221713035, %v167_v21 }
  0x19   :  { %v197_v30 = vshrl.u32 %v181_v22, 16  ;;  %v198_v31 = vshrl.u32 %v182_v23, 16  ;;  %v184_v32 = vmul.u32 2221713035, %v168_v24  ;;  %v185_v33 = vmul.u32 2221713035, %v169_v25 }
  0x1a   :  { %v226_v34 = vadd.s32 2246822507, %v210_v26  ;;  %v211_v35 = vxor.u32 %v195_v27, %v179_v17  ;;  %v212_v36 = vxor.u32 %v196_v28, %v180_v20  ;;  %v199_v37 = vshrl.u32 %v183_v29, 16 }
  0x1b   :  { %v213_v38 = vxor.u32 %v197_v30, %v181_v22  ;;  %v214_v39 = vxor.u32 %v198_v31, %v182_v23  ;;  %v200_v40 = vshrl.u32 %v184_v32, 16  ;;  %v201_v41 = vshrl.u32 %v185_v33, 16 }
  0x1c   :  { %v242_v42 = vshrl.u32 %v226_v34, 16  ;;  %v227_v43 = vadd.s32 2246822507, %v211_v35  ;;  %v228_v44 = vadd.s32 2246822507, %v212_v36  ;;  %v215_v45 = vxor.u32 %v199_v37, %v183_v29 }
  0x1d   :  { %v229_v46 = vadd.s32 2246822507, %v213_v38  ;;  %v230_v47 = vadd.s32 2246822507, %v214_v39  ;;  %v216_v48 = vxor.u32 %v200_v40, %v184_v32  ;;  %v217_v49 = vxor.u32 %v201_v41, %v185_v33 }
  0x1e   :  { %v258_v50 = vxor.u32 %v242_v42, %v226_v34  ;;  %v243_v51 = vshrl.u32 %v227_v43, 16  ;;  %v244_v52 = vshrl.u32 %v228_v44, 16  ;;  %v231_v53 = vadd.s32 2246822507, %v215_v45 }
  0x1f   :  { %v245_v54 = vshrl.u32 %v229_v46, 16  ;;  %v246_v55 = vshrl.u32 %v230_v47, 16  ;;  %v232_v56 = vadd.s32 2246822507, %v216_v48  ;;  %v233_v57 = vadd.s32 2246822507, %v217_v49 }
  0x20   :  { %v274_v58 = vmul.u32 2146121005, %v258_v50  ;;  %v259_v59 = vxor.u32 %v243_v51, %v227_v43  ;;  %v260_v60 = vxor.u32 %v244_v52, %v228_v44  ;;  %v247_v61 = vshrl.u32 %v231_v53, 16 }
  0x21   :  { %v261_v62 = vxor.u32 %v245_v54, %v229_v46  ;;  %v262_v63 = vxor.u32 %v246_v55, %v230_v47  ;;  %v248_v0 = vshrl.u32 %v232_v56, 16  ;;  %v249_v4 = vshrl.u32 %v233_v57, 16 }
  0x22   :  { %v290_v5 = vshrl.u32 %v274_v58, 15  ;;  %v275_v6 = vmul.u32 2146121005, %v259_v59  ;;  %v276_v7 = vmul.u32 2146121005, %v260_v60  ;;  %v263_v8 = vxor.u32 %v247_v61, %v231_v53 }
  0x23   :  { %v277_v9 = vmul.u32 2146121005, %v261_v62  ;;  %v278_v10 = vmul.u32 2146121005, %v262_v63  ;;  %v264_v11 = vxor.u32 %v248_v0, %v232_v56  ;;  %v265_v12 = vxor.u32 %v249_v4, %v233_v57 }
  0x24   :  { %v306_v13 = vxor.u32 %v290_v5, %v274_v58  ;;  %v291_v14 = vshrl.u32 %v275_v6, 15  ;;  %v292_v16 = vshrl.u32 %v276_v7, 15  ;;  %v279_v17 = vmul.u32 2146121005, %v263_v8 }
  0x25   :  { %v293_v20 = vshrl.u32 %v277_v9, 15  ;;  %v294_v21 = vshrl.u32 %v278_v10, 15  ;;  %v280_v22 = vmul.u32 2146121005, %v264_v11  ;;  %v281_v23 = vmul.u32 2146121005, %v265_v12 }
  0x26   :  { %v322_v24 = vmul.u32 2221713035, %v306_v13  ;;  %v307_v25 = vxor.u32 %v291_v14, %v275_v6  ;;  %v308_v26 = vxor.u32 %v292_v16, %v276_v7  ;;  %v295_v27 = vshrl.u32 %v279_v17, 15 }
  0x27   :  { %v309_v28 = vxor.u32 %v293_v20, %v277_v9  ;;  %v310_v29 = vxor.u32 %v294_v21, %v278_v10  ;;  %v296_v30 = vshrl.u32 %v280_v22, 15  ;;  %v297_v31 = vshrl.u32 %v281_v23, 15 }
  0x28   :  { %v338_v32 = vshrl.u32 %v322_v24, 16  ;;  %v323_v33 = vmul.u32 2221713035, %v307_v25  ;;  %v324_v34 = vmul.u32 2221713035, %v308_v26  ;;  %v311_v35 = vxor.u32 %v295_v27, %v279_v17 }
  0x29   :  { %v325_v36 = vmul.u32 2221713035, %v309_v28  ;;  %v326_v37 = vmul.u32 2221713035, %v310_v29  ;;  %v312_v38 = vxor.u32 %v296_v30, %v280_v22  ;;  %v313_v39 = vxor.u32 %v297_v31, %v281_v23 }
  0x2a   :  { %v354_v40 = vxor.u32 %v338_v32, %v322_v24  ;;  %v339_v41 = vshrl.u32 %v323_v33, 16  ;;  %v340_v42 = vshrl.u32 %v324_v34, 16  ;;  %v327_v43 = vmul.u32 2221713035, %v311_v35 }
  0x2b   :  { %v341_v44 = vshrl.u32 %v325_v36, 16  ;;  %v342_v45 = vshrl.u32 %v326_v37, 16  ;;  %v328_v46 = vmul.u32 2221713035, %v312_v38  ;;  %v329_v47 = vmul.u32 2221713035, %v313_v39 }
  0x2c   :  { %v370_v48 = vshrl.u32 %v354_v40, 8  ;;  %v355_v49 = vxor.u32 %v339_v41, %v323_v33  ;;  %v356_v50 = vxor.u32 %v340_v42, %v324_v34  ;;  %v343_v51 = vshrl.u32 %v327_v43, 16 }
  0x2d   :  { %v357_v52 = vxor.u32 %v341_v44, %v325_v36  ;;  %v358_v53 = vxor.u32 %v342_v45, %v326_v37  ;;  %v344_v54 = vshrl.u32 %v328_v46, 16  ;;  %v345_v55 = vshrl.u32 %v329_v47, 16 }
  0x2e   :  { %v386_v56 = vcvt.s32.f32 %v370_v48  ;;  %v371_v57 = vshrl.u32 %v355_v49, 8  ;;  %v372_v58 = vshrl.u32 %v356_v50, 8  ;;  %v359_v59 = vxor.u32 %v343_v51, %v327_v43 }
  0x2f   :  { %v373_v60 = vshrl.u32 %v357_v52, 8  ;;  %v374_v61 = vshrl.u32 %v358_v53, 8  ;;  %v360_v62 = vxor.u32 %v344_v54, %v328_v46  ;;  %v361_v63 = vxor.u32 %v345_v55, %v329_v47 }
  0x30   :  { %v402_v0 = vmul.f32 5.9604645e-08, %v386_v56  ;;  %v387_v4 = vcvt.s32.f32 %v371_v57  ;;  %v388_v5 = vcvt.s32.f32 %v372_v58  ;;  %v375_v6 = vshrl.u32 %v359_v59, 8 }
  0x31   :  { %v389_v7 = vcvt.s32.f32 %v373_v60  ;;  %v390_v8 = vcvt.s32.f32 %v374_v61  ;;  %v376_v9 = vshrl.u32 %v360_v62, 8  ;;  %v377_v10 = vshrl.u32 %v361_v63, 8 }
  0x32   :  { %418 = vst [vmem:[#allocation3] sm:$0xff] %v402_v0  ;;  %v403_v11 = vmul.f32 5.9604645e-08, %v387_v4  ;;  %v404_v12 = vmul.f32 5.9604645e-08, %v388_v5  ;;  %v391_v13 = vcvt.s32.f32 %v375_v6  ;;  %v55_v14 = vmul.u32 128, %v509_v15 }
  0x33   :  { %v405_v16 = vmul.f32 5.9604645e-08, %v389_v7  ;;  %v406_v17 = vmul.f32 5.9604645e-08, %v390_v8  ;;  %v392_v20 = vcvt.s32.f32 %v376_v9  ;;  %v393_v21 = vcvt.s32.f32 %v377_v10 }
  0x34   :  { %419 = vst [vmem:[#allocation3 + $0x8] sm:$0xff] %v403_v11  ;;  %420 = vst [vmem:[#allocation3 + $0x10] sm:$0xff] %v404_v12  ;;  %v407_v22 = vmul.f32 5.9604645e-08, %v391_v13  ;;  %v71_v23 = vadd.s32 %v55_v14, %v495_v2  ;;  %v56_v24 = vmul.u32 128, %v512_v18  ;;  %v57_v25 = vmul.u32 128, %v515_v19 }
  0x35   :  { %421 = vst [vmem:[#allocation3 + $0x18] sm:$0xff] %v405_v16  ;;  %422 = vst [vmem:[#allocation3 + $0x20] sm:$0xff] %v406_v17  ;;  %v408_v26 = vmul.f32 5.9604645e-08, %v392_v20  ;;  %v409_v27 = vmul.f32 5.9604645e-08, %v393_v21  ;;  %v22_v28 = vadd.s32 88, %v493_v1  ;;  %v23_v15 = vadd.s32 96, %v493_v1 }
  0x36   :  { %423 = vst [vmem:[#allocation3 + $0x28] sm:$0xff] %v407_v22  ;;  %v90_v29 = vxor.u32 %v497_v3, %v71_v23  ;;  %v72_v30 = vadd.s32 %v56_v24, %v495_v2  ;;  %v73_v31 = vadd.s32 %v57_v25, %v495_v2  ;;  %v24_v32 = vadd.s32 104, %v493_v1 }
  0x37   :  { %424 = vst [vmem:[#allocation3 + $0x30] sm:$0xff] %v408_v26  ;;  %425 = vst [vmem:[#allocation3 + $0x38] sm:$0xff] %v409_v27  ;;  %v58_v18 = vmul.u32 128, %v22_v28  ;;  %v59_v19 = vmul.u32 128, %v23_v15  ;;  %v25_v33 = vadd.s32 112, %v493_v1  ;;  %v26_v34 = vadd.s32 120, %v493_v1 }
  0x38   :  { %v106_v35 = vshrl.u32 %v90_v29, 16  ;;  %v91_v36 = vxor.u32 %v497_v3, %v72_v30  ;;  %v92_v37 = vxor.u32 %v497_v3, %v73_v31  ;;  %v60_v38 = vmul.u32 128, %v24_v32 }
  0x39   :  { %v74_v39 = vadd.s32 %v58_v18, %v495_v2  ;;  %v75_v40 = vadd.s32 %v59_v19, %v495_v2  ;;  %v61_v41 = vmul.u32 128, %v25_v33  ;;  %v62_v42 = vmul.u32 128, %v26_v34 }
  0x3a   :  { %v122_v43 = vxor.u32 %v106_v35, %v90_v29  ;;  %v107_v44 = vshrl.u32 %v91_v36, 16  ;;  %v108_v45 = vshrl.u32 %v92_v37, 16  ;;  %v76_v46 = vadd.s32 %v60_v38, %v495_v2 }
  0x3b   :  { %v93_v47 = vxor.u32 %v497_v3, %v74_v39  ;;  %v94_v1 = vxor.u32 %v497_v3, %v75_v40  ;;  %v77_v48 = vadd.s32 %v61_v41, %v495_v2  ;;  %v78_v49 = vadd.s32 %v62_v42, %v495_v2 }
  0x3c   :  { %v138_v50 = vmul.u32 2146121005, %v122_v43  ;;  %v123_v51 = vxor.u32 %v107_v44, %v91_v36  ;;  %v124_v52 = vxor.u32 %v108_v45, %v92_v37  ;;  %v95_v53 = vxor.u32 %v497_v3, %v76_v46 }
  0x3d   :  { %v109_v54 = vshrl.u32 %v93_v47, 16  ;;  %v110_v55 = vshrl.u32 %v94_v1, 16  ;;  %v96_v56 = vxor.u32 %v497_v3, %v77_v48  ;;  %v97_v57 = vxor.u32 %v497_v3, %v78_v49 }
  0x3e   :  { %v154_v58 = vshrl.u32 %v138_v50, 15  ;;  %v139_v59 = vmul.u32 2146121005, %v123_v51  ;;  %v140_v60 = vmul.u32 2146121005, %v124_v52  ;;  %v111_v61 = vshrl.u32 %v95_v53, 16 }
  0x3f   :  { %v125_v62 = vxor.u32 %v109_v54, %v93_v47  ;;  %v126_v63 = vxor.u32 %v110_v55, %v94_v1  ;;  %v112_v0 = vshrl.u32 %v96_v56, 16  ;;  %v113_v4 = vshrl.u32 %v97_v57, 16 }
  0x40   :  { %v170_v2 = vxor.u32 %v154_v58, %v138_v50  ;;  %v155_v5 = vshrl.u32 %v139_v59, 15  ;;  %v156_v6 = vshrl.u32 %v140_v60, 15  ;;  %v127_v7 = vxor.u32 %v111_v61, %v95_v53 }
  0x41   :  { %v141_v8 = vmul.u32 2146121005, %v125_v62  ;;  %v142_v9 = vmul.u32 2146121005, %v126_v63  ;;  %v128_v10 = vxor.u32 %v112_v0, %v96_v56  ;;  %v129_v11 = vxor.u32 %v113_v4, %v97_v57 }
  0x42   :  { %v186_v12 = vmul.u32 2221713035, %v170_v2  ;;  %v171_v13 = vxor.u32 %v155_v5, %v139_v59  ;;  %v172_v14 = vxor.u32 %v156_v6, %v140_v60  ;;  %v143_v3 = vmul.u32 2146121005, %v127_v7 }
  0x43   :  { %v157_v16 = vshrl.u32 %v141_v8, 15  ;;  %v158_v17 = vshrl.u32 %v142_v9, 15  ;;  %v144_v20 = vmul.u32 2146121005, %v128_v10  ;;  %v145_v21 = vmul.u32 2146121005, %v129_v11 }
  0x44   :  { %v202_v22 = vshrl.u32 %v186_v12, 16  ;;  %v187_v23 = vmul.u32 2221713035, %v171_v13  ;;  %v188_v24 = vmul.u32 2221713035, %v172_v14  ;;  %v159_v25 = vshrl.u32 %v143_v3, 15 }
  0x45   :  { %v173_v26 = vxor.u32 %v157_v16, %v141_v8  ;;  %v174_v27 = vxor.u32 %v158_v17, %v142_v9  ;;  %v160_v28 = vshrl.u32 %v144_v20, 15  ;;  %v161_v15 = vshrl.u32 %v145_v21, 15 }
  0x46   :  { %v218_v29 = vxor.u32 %v202_v22, %v186_v12  ;;  %v203_v30 = vshrl.u32 %v187_v23, 16  ;;  %v204_v31 = vshrl.u32 %v188_v24, 16  ;;  %v175_v32 = vxor.u32 %v159_v25, %v143_v3 }
  0x47   :  { %v189_v18 = vmul.u32 2221713035, %v173_v26  ;;  %v190_v19 = vmul.u32 2221713035, %v174_v27  ;;  %v176_v33 = vxor.u32 %v160_v28, %v144_v20  ;;  %v177_v34 = vxor.u32 %v161_v15, %v145_v21 }
  0x48   :  { %v234_v35 = vadd.s32 2246822507, %v218_v29  ;;  %v219_v36 = vxor.u32 %v203_v30, %v187_v23  ;;  %v220_v37 = vxor.u32 %v204_v31, %v188_v24  ;;  %v191_v38 = vmul.u32 2221713035, %v175_v32 }
  0x49   :  { %v205_v39 = vshrl.u32 %v189_v18, 16  ;;  %v206_v40 = vshrl.u32 %v190_v19, 16  ;;  %v192_v41 = vmul.u32 2221713035, %v176_v33  ;;  %v193_v42 = vmul.u32 2221713035, %v177_v34 }
  0x4a   :  { %v250_v43 = vshrl.u32 %v234_v35, 16  ;;  %v235_v44 = vadd.s32 2246822507, %v219_v36  ;;  %v236_v45 = vadd.s32 2246822507, %v220_v37  ;;  %v207_v46 = vshrl.u32 %v191_v38, 16 }
  0x4b   :  { %v221_v47 = vxor.u32 %v205_v39, %v189_v18  ;;  %v222_v1 = vxor.u32 %v206_v40, %v190_v19  ;;  %v208_v48 = vshrl.u32 %v192_v41, 16  ;;  %v209_v49 = vshrl.u32 %v193_v42, 16 }
  0x4c   :  { %v266_v50 = vxor.u32 %v250_v43, %v234_v35  ;;  %v251_v51 = vshrl.u32 %v235_v44, 16  ;;  %v252_v52 = vshrl.u32 %v236_v45, 16  ;;  %v223_v53 = vxor.u32 %v207_v46, %v191_v38 }
  0x4d   :  { %v237_v54 = vadd.s32 2246822507, %v221_v47  ;;  %v238_v55 = vadd.s32 2246822507, %v222_v1  ;;  %v224_v56 = vxor.u32 %v208_v48, %v192_v41  ;;  %v225_v57 = vxor.u32 %v209_v49, %v193_v42 }
  0x4e   :  { %v282_v58 = vmul.u32 2146121005, %v266_v50  ;;  %v267_v59 = vxor.u32 %v251_v51, %v235_v44  ;;  %v268_v60 = vxor.u32 %v252_v52, %v236_v45  ;;  %v239_v61 = vadd.s32 2246822507, %v223_v53 }
  0x4f   :  { %v253_v62 = vshrl.u32 %v237_v54, 16  ;;  %v254_v63 = vshrl.u32 %v238_v55, 16  ;;  %v240_v0 = vadd.s32 2246822507, %v224_v56  ;;  %v241_v4 = vadd.s32 2246822507, %v225_v57 }
  0x50   :  { %v298_v2 = vshrl.u32 %v282_v58, 15  ;;  %v283_v5 = vmul.u32 2146121005, %v267_v59  ;;  %v284_v6 = vmul.u32 2146121005, %v268_v60  ;;  %v255_v7 = vshrl.u32 %v239_v61, 16 }
  0x51   :  { %v269_v8 = vxor.u32 %v253_v62, %v237_v54  ;;  %v270_v9 = vxor.u32 %v254_v63, %v238_v55  ;;  %v256_v10 = vshrl.u32 %v240_v0, 16  ;;  %v257_v11 = vshrl.u32 %v241_v4, 16 }
  0x52   :  { %v314_v12 = vxor.u32 %v298_v2, %v282_v58  ;;  %v299_v13 = vshrl.u32 %v283_v5, 15  ;;  %v300_v14 = vshrl.u32 %v284_v6, 15  ;;  %v271_v3 = vxor.u32 %v255_v7, %v239_v61 }
  0x53   :  { %v285_v16 = vmul.u32 2146121005, %v269_v8  ;;  %v286_v17 = vmul.u32 2146121005, %v270_v9  ;;  %v272_v20 = vxor.u32 %v256_v10, %v240_v0  ;;  %v273_v21 = vxor.u32 %v257_v11, %v241_v4 }
  0x54   :  { %v330_v22 = vmul.u32 2221713035, %v314_v12  ;;  %v315_v23 = vxor.u32 %v299_v13, %v283_v5  ;;  %v316_v24 = vxor.u32 %v300_v14, %v284_v6  ;;  %v287_v25 = vmul.u32 2146121005, %v271_v3 }
  0x55   :  { %v301_v26 = vshrl.u32 %v285_v16, 15  ;;  %v302_v27 = vshrl.u32 %v286_v17, 15  ;;  %v288_v28 = vmul.u32 2146121005, %v272_v20  ;;  %v289_v15 = vmul.u32 2146121005, %v273_v21 }
  0x56   :  { %v346_v29 = vshrl.u32 %v330_v22, 16  ;;  %v331_v30 = vmul.u32 2221713035, %v315_v23  ;;  %v332_v31 = vmul.u32 2221713035, %v316_v24  ;;  %v303_v32 = vshrl.u32 %v287_v25, 15 }
  0x57   :  { %v317_v18 = vxor.u32 %v301_v26, %v285_v16  ;;  %v318_v19 = vxor.u32 %v302_v27, %v286_v17  ;;  %v304_v33 = vshrl.u32 %v288_v28, 15  ;;  %v305_v34 = vshrl.u32 %v289_v15, 15 }
  0x58   :  { %v362_v35 = vxor.u32 %v346_v29, %v330_v22  ;;  %v347_v36 = vshrl.u32 %v331_v30, 16  ;;  %v348_v37 = vshrl.u32 %v332_v31, 16  ;;  %v319_v38 = vxor.u32 %v303_v32, %v287_v25 }
  0x59   :  { %v333_v39 = vmul.u32 2221713035, %v317_v18  ;;  %v334_v40 = vmul.u32 2221713035, %v318_v19  ;;  %v320_v41 = vxor.u32 %v304_v33, %v288_v28  ;;  %v321_v42 = vxor.u32 %v305_v34, %v289_v15 }
  0x5a   :  { %v378_v43 = vshrl.u32 %v362_v35, 8  ;;  %v363_v44 = vxor.u32 %v347_v36, %v331_v30  ;;  %v364_v45 = vxor.u32 %v348_v37, %v332_v31  ;;  %v335_v46 = vmul.u32 2221713035, %v319_v38 }
  0x5b   :  { %v349_v47 = vshrl.u32 %v333_v39, 16  ;;  %v350_v1 = vshrl.u32 %v334_v40, 16  ;;  %v336_v48 = vmul.u32 2221713035, %v320_v41  ;;  %v337_v49 = vmul.u32 2221713035, %v321_v42 }
  0x5c   :  { %v394_v50 = vcvt.s32.f32 %v378_v43  ;;  %v379_v51 = vshrl.u32 %v363_v44, 8  ;;  %v380_v52 = vshrl.u32 %v364_v45, 8  ;;  %v351_v53 = vshrl.u32 %v335_v46, 16 }
  0x5d   :  { %v365_v54 = vxor.u32 %v349_v47, %v333_v39  ;;  %v366_v55 = vxor.u32 %v350_v1, %v334_v40  ;;  %v352_v56 = vshrl.u32 %v336_v48, 16  ;;  %v353_v57 = vshrl.u32 %v337_v49, 16 }
  0x5e   :  { %v410_v58 = vmul.f32 5.9604645e-08, %v394_v50  ;;  %v395_v59 = vcvt.s32.f32 %v379_v51  ;;  %v396_v60 = vcvt.s32.f32 %v380_v52  ;;  %v367_v61 = vxor.u32 %v351_v53, %v335_v46 }
  0x5f   :  { %v381_v62 = vshrl.u32 %v365_v54, 8  ;;  %v382_v63 = vshrl.u32 %v366_v55, 8  ;;  %v368_v0 = vxor.u32 %v352_v56, %v336_v48  ;;  %v369_v4 = vxor.u32 %v353_v57, %v337_v49 }
  0x60   :  { %426 = vst [vmem:[#allocation3 + $0x40] sm:$0xff] %v410_v58  ;;  %v411_v2 = vmul.f32 5.9604645e-08, %v395_v59  ;;  %v412_v5 = vmul.f32 5.9604645e-08, %v396_v60  ;;  %v383_v6 = vshrl.u32 %v367_v61, 8 }
  0x61   :  { %v397_v7 = vcvt.s32.f32 %v381_v62  ;;  %v398_v8 = vcvt.s32.f32 %v382_v63  ;;  %v384_v9 = vshrl.u32 %v368_v0, 8  ;;  %v385_v10 = vshrl.u32 %v369_v4, 8 }
  0x62   :  { %427 = vst [vmem:[#allocation3 + $0x48] sm:$0xff] %v411_v2  ;;  %428 = vst [vmem:[#allocation3 + $0x50] sm:$0xff] %v412_v5  ;;  %v399_v11 = vcvt.s32.f32 %v383_v6 }
  0x63   :  { %v413_v12 = vmul.f32 5.9604645e-08, %v397_v7  ;;  %v414_v13 = vmul.f32 5.9604645e-08, %v398_v8  ;;  %v400_v14 = vcvt.s32.f32 %v384_v9  ;;  %v401_v3 = vcvt.s32.f32 %v385_v10 }
  0x64   :  { %v415_v16 = vmul.f32 5.9604645e-08, %v399_v11 }
  0x65   :  { %429 = vst [vmem:[#allocation3 + $0x58] sm:$0xff] %v413_v12  ;;  %430 = vst [vmem:[#allocation3 + $0x60] sm:$0xff] %v414_v13  ;;  %v416_v17 = vmul.f32 5.9604645e-08, %v400_v14  ;;  %v417_v20 = vmul.f32 5.9604645e-08, %v401_v3 }
  0x66   :  { %431 = vst [vmem:[#allocation3 + $0x68] sm:$0xff] %v415_v16 }
  0x67   :  { %432 = vst [vmem:[#allocation3 + $0x70] sm:$0xff] %v416_v17  ;;  %433 = vst [vmem:[#allocation3 + $0x78] sm:$0xff] %v417_v20 }
  0x68   :  { %464 = shalt.err (!%p461_p4)
}
  0x69   :  { %s465_s13 = scalar_lea.hbm %s569_s1, 2048 }
  0x6a   :  { %p466_p5 = scmp.ne.s32.totalorder %s569_s1, %s465_s13  ;;  %p469_p6 = scmp.lt.u32.totalorder %s465_s13, %s569_s1 }
  0x6c   :  { %p471_p7 = pnand %p469_p6, %p466_p5 }
  0x6e   :  { %474 = shalt.err (!%p471_p7)
}
  0x6f   :  { %s478_s18 = smov 128   ;;  %s479_s19 = smov 8  }
  0x70   :  { %445 = dma.vmem_to_hbm [thread:$0]  %s440_s9, 2048, %s569_s1, [#allocation4], %s478_s18, %s478_s18, %s479_s19  }
  0x71   :  { %475 = dma.done.wait [#allocation4], 2048  }
  0x72   :  { %476 = vsyncadd [#allocation4], 4294965248 }
  0x73   :  { %449 = vsyncpa [#allocation4], 1 }

</bundles_post_ra>
